<compile_context>
chip_gen: v7x
topology: tpu7x:2x2x1
jax: 0.10.0
libtpu: 0.0.40
codegen_flags: <defaults>
</compile_context>

<pallas_src>
import jax
import jax.numpy as jnp
from jax.experimental import pallas as pl
from jax.experimental.pallas import tpu as pltpu

_MAX_TILE_ELEMS = 256 * 1024   # ~1 MiB f32 per operand block (x2 operands x2 buffers ~4 MiB)


def _num_tensorcores():
    """2 on multi-TensorCore devices (v4/v5p megacore, v7x), else 1."""
    try:
        info = pltpu.get_tpu_info()
        for name in ("num_cores", "num_tensorcores", "tensorcore_count", "core_count"):
            try:
                v = getattr(info, name, None)
                if v is not None and int(v) >= 1:
                    return min(int(v), 2)
            except (TypeError, ValueError):
                pass
    except Exception:
        pass
    try:
        kind = jax.devices()[0].device_kind.lower()
        if any(tag in kind for tag in ("v4", "v5p", "v7")):
            return 2
    except Exception:
        pass
    return 1


def _min_tile_rows(dtype):
    # Sub-32-bit dtypes pack along sublanes: packed tiles are (16,128) bf16, (32,128) int8.
    return {4: 8, 2: 16, 1: 32}.get(jnp.dtype(dtype).itemsize, 8)


def _pick_tile_rows(rows_per_core, min_rows, max_rows):
    tr = min_rows
    # Grow while at least 2 blocks per core remain after doubling (pipeline overlap).
    while tr < max_rows and rows_per_core >= 4 * tr:
        tr *= 2
    return min(tr, max_rows)


def _make_kernel(valid_rows, tile_rows, lanes, blocks_per_core, inv_n):
    inv_n = float(inv_n)

    def kernel(w_ref, inp_ref, tgt_ref, out_ref, acc_ref):
        c = pl.program_id(0)     # core split ("parallel")
        i = pl.program_id(1)     # streamed reduction axis ("arbitrary")

        @pl.when(i == 0)
        def _init():
            acc_ref[...] = jnp.zeros_like(acc_ref)

        x = inp_ref[...].astype(jnp.float32)
        t = tgt_ref[...].astype(jnp.float32)
        d = x - t
        sq = d * d                                              # (tile_rows, lanes)

        block_start = (c * blocks_per_core + i) * tile_rows
        in_bounds = block_start + tile_rows <= valid_rows

        @pl.when(in_bounds)
        def _full():
            acc_ref[...] += jnp.sum(sq, axis=0, keepdims=True)

        @pl.when(jnp.logical_not(in_bounds))
        def _ragged():
            # Only the (at most one) ragged tile per core pays for the mask.
            row = block_start + jax.lax.broadcasted_iota(jnp.int32, sq.shape, 0)
            sq_m = jnp.where(row < valid_rows, sq, jnp.float32(0.0))
            acc_ref[...] += jnp.sum(sq_m, axis=0, keepdims=True)

        @pl.when(i == blocks_per_core - 1)
        def _finalize():
            # Lane parity == channel parity (lanes is even, every row starts at
            # an even flat offset), so the weight is applied exactly once here.
            w = w_ref[0, 0]
            lane = jax.lax.broadcasted_iota(jnp.int32, acc_ref.shape, 1)
            wvec = jnp.where(lane % 2 == 0, w, jnp.float32(1.0))
            out_ref[0, 0] = jnp.sum(acc_ref[...] * wvec) * inv_n

    return kernel


@jax.jit
def weighted_mse_loss(inputs, targets, weight):
    assert inputs.shape == targets.shape
    assert inputs.ndim >= 2 and inputs.shape[1] == 2, "channel axis (dim 1) must be 2"

    if inputs.ndim > 2:
        # TODO(synk): the ndim>2 path materializes a channel-last transpose in
        # HBM; a layout-native kernel for (N, 2, ...) would avoid that copy.
        inputs = jnp.moveaxis(inputs, 1, -1)
        targets = jnp.moveaxis(targets, 1, -1)

    inp_flat = inputs.reshape(-1)          # channel-interleaved; free reshape for (N, 2)
    tgt_flat = targets.reshape(-1)
    total = inp_flat.shape[0]              # 2 * n_pairs
    n_pairs = total // 2

    # Largest lane-dense width dividing the flat length -> the 2-D view is a
    # free reshape (no pad copy).  Fallback: 128 lanes + a small tail pad.
    for lanes in (512, 256, 128):
        if total % lanes == 0:
            break
    else:
        lanes = 128

    min_rows = max(_min_tile_rows(inputs.dtype), _min_tile_rows(targets.dtype))
    rows_needed = pl.cdiv(total, lanes)
    rows = max(rows_needed, min_rows)      # at least one full sublane granule
    pad = rows * lanes - total
    if pad:
        # Only hit when 2*N is not a multiple of 128 or the input is tiny; the
        # zero padding contributes nothing to the sum.
        inp_flat = jnp.pad(inp_flat, (0, pad))
        tgt_flat = jnp.pad(tgt_flat, (0, pad))

    inp2d = inp_flat.reshape(rows, lanes)
    tgt2d = tgt_flat.reshape(rows, lanes)

    ncores = _num_tensorcores()
    max_rows = max(_MAX_TILE_ELEMS // lanes, min_rows)
    rows_per_core = pl.cdiv(rows, ncores)
    tile_rows = _pick_tile_rows(rows_per_core, min_rows, max_rows)
    blocks_per_core = pl.cdiv(rows_per_core, tile_rows)
    last_block = pl.cdiv(rows, tile_rows) - 1

    def block_map(c, i):
        idx = c * blocks_per_core + i
        # Clamp so a core's trailing (fully out-of-range, fully masked) logical
        # blocks never DMA out of bounds.
        return (jnp.minimum(idx, last_block), 0)

    kernel = _make_kernel(valid_rows=rows, tile_rows=tile_rows, lanes=lanes,
                          blocks_per_core=blocks_per_core, inv_n=1.0 / n_pairs)

    w_arr = jnp.asarray(weight, dtype=jnp.float32).reshape(1, 1)

    partials = pl.pallas_call(
        kernel,
        out_shape=jax.ShapeDtypeStruct((ncores, 1), jnp.float32),
        grid=(ncores, blocks_per_core),
        in_specs=[
            pl.BlockSpec(memory_space=pltpu.SMEM),            # weight scalar
            pl.BlockSpec((tile_rows, lanes), block_map),      # inputs
            pl.BlockSpec((tile_rows, lanes), block_map),      # targets
        ],
        out_specs=pl.BlockSpec((1, 1), lambda c, i: (c, 0),
                               memory_space=pltpu.SMEM),
        scratch_shapes=[pltpu.VMEM((1, lanes), jnp.float32)],
        compiler_params=pltpu.CompilerParams(
            dimension_semantics=("parallel", "arbitrary"),
            vmem_limit_bytes=32 * 1024 * 1024),
    )(w_arr, inp2d, tgt2d)

    # Each per-core partial is already scaled by 1/n_pairs; the mean is their sum.
    return jnp.sum(partials)


def _reference(inputs, targets, weight):
    return jnp.mean(weight * (inputs[:, 0] - targets[:, 0]) ** 2
                    + (inputs[:, 1] - targets[:, 1]) ** 2)


if __name__ == "__main__":
    key = jax.random.PRNGKey(0)

    # Case 1: small shape consistent with the module (batch=8, channels=2).
    k_in, k_tgt, key = jax.random.split(key, 3)
    inputs = jax.random.normal(k_in, (8, 2), dtype=jnp.float32)
    targets = jax.random.normal(k_tgt, (8, 2), dtype=jnp.float32)
    weight = 2.5
    loss = weighted_mse_loss(inputs, targets, weight)
    jax.block_until_ready(loss)
    ref = _reference(inputs, targets, weight)
    assert jnp.allclose(loss, ref, rtol=1e-5, atol=1e-5), (loss, ref)

    # Case 2: exercises the no-pad path + in-kernel ragged-tile masking and a
    # different (runtime) weight value without recompiling per weight.
    k_in2, k_tgt2, key = jax.random.split(key, 3)
    inputs2 = jax.random.normal(k_in2, (1152, 2), dtype=jnp.float32)
    targets2 = jax.random.normal(k_tgt2, (1152, 2), dtype=jnp.float32)
    weight2 = 0.75
    loss2 = weighted_mse_loss(inputs2, targets2, weight2)
    jax.block_until_ready(loss2)
    ref2 = _reference(inputs2, targets2, weight2)
    assert jnp.allclose(loss2, ref2, rtol=1e-5, atol=1e-5), (loss2, ref2)

    print("KERNEL_OK")
</pallas_src>

<mosaic_0001>
module attributes {stable_mosaic.version = 11 : i64} {
  func.func @kernel(%arg0: i32, %arg1: i32, %arg2: memref<1x1xf32, #tpu.memory_space<smem>>, %arg3: memref<8x128xf32, #tpu.memory_space<vmem>>, %arg4: memref<8x128xf32, #tpu.memory_space<vmem>>, %arg5: memref<1x1xf32, #tpu.memory_space<smem>>, %arg6: memref<1x128xf32, #tpu.memory_space<vmem>>) attributes {dimension_semantics = [#tpu.dimension_semantics<parallel>, #tpu.dimension_semantics<arbitrary>], iteration_bounds = array<i64: 1, 1>, scalar_prefetch = 0 : i64, scratch_operands = 1 : i64, tpu.core_type = #tpu.core_type<tc>, window_params = [{transform_indices = @transform_0, window_bounds = array<i64: 1, 1>}, {transform_indices = @transform_1, window_bounds = array<i64: 8, 128>}, {transform_indices = @transform_2, window_bounds = array<i64: 8, 128>}, {transform_indices = @transform_3, window_bounds = array<i64: 1, 1>}]} {
    %c0_i32 = arith.constant 0 : i32
    %0 = arith.cmpi eq, %arg1, %c0_i32 : i32
    %1 = arith.extui %0 : i1 to i32
    %c0_i32_0 = arith.constant 0 : i32
    %2 = arith.cmpi ne, %1, %c0_i32_0 : i32
    scf.if %2 {
      %cst = arith.constant 0.000000e+00 : f32
      %20 = vector.broadcast %cst : f32 to vector<1x128xf32>
      %c0_10 = arith.constant 0 : index
      %c0_11 = arith.constant 0 : index
      %21 = vector.load %arg6[%c0_10, %c0_11] : memref<1x128xf32, #tpu.memory_space<vmem>>, vector<1x128xf32>
      tpu.vector_store %arg6[%c0_10, %c0_11], %20 {strides = array<i32>} : memref<1x128xf32, #tpu.memory_space<vmem>>, vector<1x128xf32>,
    } else {
    }
    %c0 = arith.constant 0 : index
    %c0_1 = arith.constant 0 : index
    %3 = vector.load %arg3[%c0, %c0_1] : memref<8x128xf32, #tpu.memory_space<vmem>>, vector<8x128xf32>
    %c0_2 = arith.constant 0 : index
    %c0_3 = arith.constant 0 : index
    %4 = vector.load %arg4[%c0_2, %c0_3] : memref<8x128xf32, #tpu.memory_space<vmem>>, vector<8x128xf32>
    %5 = arith.subf %3, %4 : vector<8x128xf32>
    %6 = arith.mulf %5, %5 : vector<8x128xf32>
    %c1_i32 = arith.constant 1 : i32
    %7 = arith.muli %arg0, %c1_i32 : i32
    %8 = arith.addi %7, %arg1 : i32
    %c8_i32 = arith.constant 8 : i32
    %9 = arith.muli %8, %c8_i32 : i32
    %c8_i32_4 = arith.constant 8 : i32
    %10 = arith.addi %9, %c8_i32_4 : i32
    %c8_i32_5 = arith.constant 8 : i32
    %11 = arith.cmpi sle, %10, %c8_i32_5 : i32
    %12 = arith.extui %11 : i1 to i32
    %c0_i32_6 = arith.constant 0 : i32
    %13 = arith.cmpi ne, %12, %c0_i32_6 : i32
    scf.if %13 {
      %c0_10 = arith.constant 0 : index
      %c0_11 = arith.constant 0 : index
      %20 = vector.load %arg6[%c0_10, %c0_11] : memref<1x128xf32, #tpu.memory_space<vmem>>, vector<1x128xf32>
      %cst = arith.constant dense<0.000000e+00> : vector<128xf32>
      %21 = vector.multi_reduction <add>, %6, %cst [0] : vector<8x128xf32> to vector<128xf32>
      %22 = vector.shape_cast %21 : vector<128xf32> to vector<1x128xf32>
      %23 = arith.addf %20, %22 : vector<1x128xf32>
      %c0_12 = arith.constant 0 : index
      %c0_13 = arith.constant 0 : index
      %24 = vector.load %arg6[%c0_12, %c0_13] : memref<1x128xf32, #tpu.memory_space<vmem>>, vector<1x128xf32>
      tpu.vector_store %arg6[%c0_12, %c0_13], %23 {strides = array<i32>} : memref<1x128xf32, #tpu.memory_space<vmem>>, vector<1x128xf32>,
    } else {
    }
    %true = arith.constant true
    %14 = arith.xori %11, %true : i1
    %15 = arith.extui %14 : i1 to i32
    %c0_i32_7 = arith.constant 0 : i32
    %16 = arith.cmpi ne, %15, %c0_i32_7 : i32
    scf.if %16 {
      %20 = tpu.iota {dimensions = array<i32: 0>} : vector<8x128xi32>
      %21 = vector.broadcast %9 : i32 to vector<8x128xi32>
      %22 = arith.addi %21, %20 : vector<8x128xi32>
      %c8_i32_10 = arith.constant 8 : i32
      %23 = vector.broadcast %c8_i32_10 : i32 to vector<8x128xi32>
      %24 = arith.cmpi slt, %22, %23 : vector<8x128xi32>
      %cst = arith.constant 0.000000e+00 : f32
      %25 = vector.broadcast %cst : f32 to vector<8x128xf32>
      %26 = arith.select %24, %6, %25 : vector<8x128xi1>, vector<8x128xf32>
      %c0_11 = arith.constant 0 : index
      %c0_12 = arith.constant 0 : index
      %27 = vector.load %arg6[%c0_11, %c0_12] : memref<1x128xf32, #tpu.memory_space<vmem>>, vector<1x128xf32>
      %cst_13 = arith.constant dense<0.000000e+00> : vector<128xf32>
      %28 = vector.multi_reduction <add>, %26, %cst_13 [0] : vector<8x128xf32> to vector<128xf32>
      %29 = vector.shape_cast %28 : vector<128xf32> to vector<1x128xf32>
      %30 = arith.addf %27, %29 : vector<1x128xf32>
      %c0_14 = arith.constant 0 : index
      %c0_15 = arith.constant 0 : index
      %31 = vector.load %arg6[%c0_14, %c0_15] : memref<1x128xf32, #tpu.memory_space<vmem>>, vector<1x128xf32>
      tpu.vector_store %arg6[%c0_14, %c0_15], %30 {strides = array<i32>} : memref<1x128xf32, #tpu.memory_space<vmem>>, vector<1x128xf32>,
    } else {
    }
    %c0_i32_8 = arith.constant 0 : i32
    %17 = arith.cmpi eq, %arg1, %c0_i32_8 : i32
    %18 = arith.extui %17 : i1 to i32
    %c0_i32_9 = arith.constant 0 : i32
    %19 = arith.cmpi ne, %18, %c0_i32_9 : i32
    scf.if %19 {
      %c0_10 = arith.constant 0 : index
      %c0_11 = arith.constant 0 : index
      %20 = memref.load %arg2[%c0_10, %c0_11] : memref<1x1xf32, #tpu.memory_space<smem>>
      %21 = tpu.iota {dimensions = array<i32: 1>} : vector<1x128xi32>
      %c2_i32 = arith.constant 2 : i32
      %c0_i32_12 = arith.constant 0 : i32
      %22 = arith.cmpi eq, %c2_i32, %c0_i32_12 : i32
      %c1_i32_13 = arith.constant 1 : i32
      %23 = arith.select %22, %c1_i32_13, %c2_i32 : i32
      %24 = vector.broadcast %23 : i32 to vector<1x128xi32>
      %25 = arith.remsi %21, %24 : vector<1x128xi32>
      %c0_i32_14 = arith.constant 0 : i32
      %26 = vector.broadcast %c0_i32_14 : i32 to vector<1x128xi32>
      %27 = arith.cmpi ne, %25, %26 : vector<1x128xi32>
      %c0_i32_15 = arith.constant 0 : i32
      %28 = vector.broadcast %c0_i32_15 : i32 to vector<1x128xi32>
      %29 = arith.cmpi slt, %25, %28 : vector<1x128xi32>
      %c0_i32_16 = arith.constant 0 : i32
      %30 = arith.cmpi slt, %23, %c0_i32_16 : i32
      %31 = vector.broadcast %30 : i1 to vector<1x128xi1>
      %32 = vector.broadcast %31 : vector<1x128xi1> to vector<1x128xi1>
      %33 = arith.xori %29, %32 : vector<1x128xi1>
      %34 = arith.andi %33, %27 : vector<1x128xi1>
      %35 = vector.broadcast %23 : i32 to vector<1x128xi32>
      %36 = arith.addi %25, %35 : vector<1x128xi32>
      %37 = arith.select %34, %36, %25 : vector<1x128xi1>, vector<1x128xi32>
      %c0_i32_17 = arith.constant 0 : i32
      %38 = vector.broadcast %c0_i32_17 : i32 to vector<1x128xi32>
      %39 = arith.cmpi eq, %37, %38 : vector<1x128xi32>
      %cst = arith.constant 1.000000e+00 : f32
      %40 = vector.broadcast %20 : f32 to vector<1x128xf32>
      %41 = vector.broadcast %cst : f32 to vector<1x128xf32>
      %42 = arith.select %39, %40, %41 : vector<1x128xi1>, vector<1x128xf32>
      %c0_18 = arith.constant 0 : index
      %c0_19 = arith.constant 0 : index
      %43 = vector.load %arg6[%c0_18, %c0_19] : memref<1x128xf32, #tpu.memory_space<vmem>>, vector<1x128xf32>
      %44 = arith.mulf %43, %42 : vector<1x128xf32>
      %45 = vector.shape_cast %44 : vector<1x128xf32> to vector<1x1x128xf32>
      %cst_20 = arith.constant dense<0.000000e+00> : vector<1xf32>
      %46 = vector.multi_reduction <add>, %45, %cst_20 [1, 2] : vector<1x1x128xf32> to vector<1xf32>
      %47 = vector.shape_cast %46 : vector<1xf32> to vector<1x1x1xf32>
      %48 = vector.extract %47[0, 0, 0] : f32 from vector<1x1x1xf32>
      %cst_21 = arith.constant 1.250000e-01 : f32
      %49 = arith.mulf %48, %cst_21 : f32
      %c0_22 = arith.constant 0 : index
      %c0_23 = arith.constant 0 : index
      %50 = memref.load %arg5[%c0_22, %c0_23] : memref<1x1xf32, #tpu.memory_space<smem>>
      memref.store %49, %arg5[%c0_22, %c0_23] : memref<1x1xf32, #tpu.memory_space<smem>>
    } else {
    }
    return
  }
  func.func @transform_0(%arg0: i32, %arg1: i32) -> (i32, i32) {
    %c0_i32 = arith.constant 0 : i32
    %c0_i32_0 = arith.constant 0 : i32
    %c0_i32_1 = arith.constant 0 : i32
    return %c0_i32, %c0_i32_0 : i32, i32
  }
  func.func @transform_1(%arg0: i32, %arg1: i32) -> (i32, i32) {
    %c1_i32 = arith.constant 1 : i32
    %0 = arith.muli %arg0, %c1_i32 : i32
    %1 = arith.addi %0, %arg1 : i32
    %c0_i32 = arith.constant 0 : i32
    %2 = arith.minsi %1, %c0_i32 : i32
    %c0_i32_0 = arith.constant 0 : i32
    %c0_i32_1 = arith.constant 0 : i32
    return %2, %c0_i32_0 : i32, i32
  }
  func.func @transform_2(%arg0: i32, %arg1: i32) -> (i32, i32) {
    %c1_i32 = arith.constant 1 : i32
    %0 = arith.muli %arg0, %c1_i32 : i32
    %1 = arith.addi %0, %arg1 : i32
    %c0_i32 = arith.constant 0 : i32
    %2 = arith.minsi %1, %c0_i32 : i32
    %c0_i32_0 = arith.constant 0 : i32
    %c0_i32_1 = arith.constant 0 : i32
    return %2, %c0_i32_0 : i32, i32
  }
  func.func @transform_3(%arg0: i32, %arg1: i32) -> (i32, i32) {
    %c0_i32 = arith.constant 0 : i32
    %c0_i32_0 = arith.constant 0 : i32
    return %arg0, %c0_i32 : i32, i32
  }
}

</mosaic_0001>

<bundles_post_ra>
// kernel: weighted_mse_loss.1
= control target key start
LH: loop header
LB: loop body
LE: loop exit
PB: predicated region body
PF: predicated region fallthrough
CT: control target
= control target key end

     0   :  { %s235_s0 = inlined_call_operand.<no memory space> [shape: f32[1,1], index: 0, kind: input, shape index: {}]   ;;  %s236_s1 = inlined_call_operand.vmem [shape: f32[8,128], index: 1, kind: input, shape index: {}]   ;;  %s237_s2 = inlined_call_operand.vmem [shape: f32[8,128], index: 2, kind: input, shape index: {}]   ;;  %s238_s3 = inlined_call_operand.hbm [shape: f32[1,1], index: 3, kind: output, shape index: {}]  }
   0x1   :  { %v75_v0 = vld [vmem:[%s236_s1] sm:$0xff] }
   0x2   :  { %v76_v1 = vld [vmem:[%s237_s2] sm:$0xff] }
   0x3   :  { %9 = vsyncpa [#allocation5], 0  ;;  %v192_v2 = vmov 0.0   ;;  %v77_v3 = vsub.f32 %v75_v0, %v76_v1  ;;  %v118_v8 = vlaneseq  ;;  %v133_v16 = vstv %s235_s0  ;;  %s180_s0 = scalar_lea.hbm %s238_s3, 16 }
   0x4   :  { %74 = vst [vmem:[#allocation2] sm:$0x1] %v192_v2  ;;  %vm137_vm1 = vcmask 1040384   ;;  %p181_p0 = scmp.ne.s32.totalorder %s238_s3, %s180_s0  ;;  %p184_p1 = scmp.lt.u32.totalorder %s180_s0, %s238_s3 }
   0x5   :  { %v78_v4 = vmul.f32 %v77_v3, %v77_v3  ;;  %v119_v11 = vand.u32 127, %v118_v8 }
   0x6   :  { %p186_p2 = pnand %p184_p1, %p181_p0 }
   0x7   :  { %v87_v5 = vrot.slane %v78_v4, 4  ;;  %v124_v15 = vand.u32 1, %v119_v11 }
   0x9   :  { %v88_v6 = vadd.f32 %v87_v5, %v78_v4  ;;  %vm132_vm0 = vcmp.eq.s32.totalorder %v124_v15, 0 }
   0xa   :  { %v134_v17 = vsel %vm132_vm0, %v133_v16, 1.0 }
   0xb   :  { %v89_v7 = vrot.slane %v88_v6, 2  ;;  %v86_v12 = vld [vmem:[#allocation2] sm:$0x1] }
   0xd   :  { %v90_v9 = vadd.f32 %v89_v7, %v88_v6 }
   0xf   :  { %v91_v10 = vrot.slane %v90_v9, 1 }
  0x11   :  { %v92_v13 = vadd.f32 %v91_v10, %v90_v9 }
  0x13   :  { %v93_v14 = vadd.f32 %v92_v13, %v86_v12 }
  0x15   :  { %94 = vst [vmem:[#allocation2] sm:$0x1] %v93_v14 }
  0x1c   :  { %v135_v18 = vld [vmem:[#allocation2] sm:$0x1] }
  0x1d   :  { %v136_v19 = vmul.f32 %v135_v18, %v134_v17 }
  0x1f   :  { %v138_v20 = vsel %vm137_vm1, %v136_v19, 0.0 }
  0x20   :  { %139 = vadd.xlane.f32.xlu0 %v138_v20 }
  0xad   :  { %v140_v21 = vpop.xlane.xlu0 %139 }
  0xae   :  { %v141_v22 = vrot.slane %v140_v21, 4 }
  0xb0   :  { %v142_v23 = vadd.f32 %v141_v22, %v140_v21 }
  0xb2   :  { %v143_v24 = vrot.slane %v142_v23, 2 }
  0xb4   :  { %v144_v25 = vadd.f32 %v143_v24, %v142_v23 }
  0xb6   :  { %v145_v26 = vrot.slane %v144_v25, 1 }
  0xb8   :  { %v146_v27 = vadd.f32 %v145_v26, %v144_v25 }
  0xba   :  { %176 = vpush %v146_v27 }
  0xeb   :  { %s177_s16 = spop %176 }
  0xec   :  { %s148_s17 = smul.f32 0.125, %s177_s16 }
  0xee   :  { %150 = sst [smem:[#allocation4]] %s148_s17 }
  0xef   :  { %189 = shalt.err (!%p186_p2)
}
  0xf0   :  { %s193_s24 = smov [#allocation4]  }
  0xf1   :  { %158 = dma.smem_to_hbm %s193_s24, 16, %s238_s3, [#allocation5]  }
  0xf2   :  { %190 = dma.done.wait [#allocation5], 16  }
  0xf3   :  { %191 = vsyncadd [#allocation5], 4294967280 }
  0xf4   :  { %162 = sfence }
  0xf5   :  { %163 = vsyncpa [#allocation5], 1 }

</bundles_post_ra>
